<compile_context>
chip_gen: v6e
topology: v6e:2x2x1
jax: 0.10.0
libtpu: 0.0.40
codegen_flags: <defaults>
</compile_context>

<pallas_src>
import math
import jax
import jax.numpy as jnp
from jax import lax
from jax.experimental import pallas as pl
from jax.experimental.pallas import tpu as pltpu

# ----- small, module-consistent sizes -----
B = 2            # batch
N_ENCODE = 16    # n_encode
N_HIDDEN = 32    # n_hidden
N_COMMAND = 8    # n_command
D = 16           # n_state
N_FEATURE = 8    # n_feature (even)
H = 2            # n_task (attention heads)
M = D * (N_FEATURE // 2)   # 64  -> y is (B, 2M) = (B, 128) lane-dense
LN_EPS = 1e-5
INV_SQRT_D = 1.0 / math.sqrt(D)

# ----- exact GELU (matches torch F.gelu, approximate='none') -----
# erf via Abramowitz & Stegun 7.1.26 (|err| < 1.5e-7 in f32) using only ops that
# are guaranteed to lower in Mosaic (exp / mul / add / div / where / abs).
_ERF_A = (0.254829592, -0.284496736, 1.421413741, -1.453152027, 1.061405429)
_ERF_P = 0.3275911


def _erf_kernel(x):
    s = jnp.where(x >= 0.0, 1.0, -1.0)
    ax = jnp.abs(x)
    t = 1.0 / (1.0 + _ERF_P * ax)
    a1, a2, a3, a4, a5 = _ERF_A
    poly = ((((a5 * t + a4) * t + a3) * t + a2) * t + a1) * t
    return s * (1.0 - poly * jnp.exp(-ax * ax))


def _gelu_exact_kernel(x):
    return 0.5 * x * (1.0 + _erf_kernel(x * (1.0 / math.sqrt(2.0))))


# ----------------- fused Pallas kernel -----------------
def _feature_attn_kernel(feat_ref, hid_ref, cmd_ref,
                         wzT_ref, whT_ref, wqT_ref, wkvT_ref,
                         g_ref, b_ref, out_ref, y_scr):
    # ---- stage 1: projections + exact GELU (lane-dense, no concatenate) ----
    z = _gelu_exact_kernel(
        jnp.dot(feat_ref[...], wzT_ref[...], preferred_element_type=jnp.float32))  # (B, M)
    h = _gelu_exact_kernel(
        jnp.dot(hid_ref[...], whT_ref[...], preferred_element_type=jnp.float32))   # (B, M)

    # torch: y = cat([z, h], dim=1).reshape(B, N_FEATURE, D)
    # Realized here as static slice stores into a (B*N_FEATURE, D) VMEM scratch
    # (rows are batch-major, matching the row-major reshape).
    half_n = N_FEATURE // 2
    for b in range(B):
        for n in range(N_FEATURE):
            if n < half_n:
                chunk = z[b:b + 1, n * D:(n + 1) * D]
            else:
                chunk = h[b:b + 1, (n - half_n) * D:(n - half_n + 1) * D]
            r = b * N_FEATURE + n
            y_scr[r:r + 1, :] = chunk                                # (1, D) store

    # ---- stage 2: LayerNorm over D for all B*N rows at once ----
    y = y_scr[...]                                                   # (B*N, D)
    mean = jnp.mean(y, axis=-1, keepdims=True)
    var = jnp.mean((y - mean) ** 2, axis=-1, keepdims=True)
    yn = (y - mean) * lax.rsqrt(var + LN_EPS) * g_ref[...] + b_ref[...]

    # Q projection (one matmul for both batch rows)
    q_all = jnp.dot(cmd_ref[...], wqT_ref[...],
                    preferred_element_type=jnp.float32)              # (B, H*D)

    # packed K|V projection: one matmul covering both batches and both halves
    kv = jnp.dot(yn, wkvT_ref[...], preferred_element_type=jnp.float32)   # (B*N, 2*H*D)
    k_all = kv[:, :H * D]                                            # (B*N, H*D)
    v_all = kv[:, H * D:]                                            # (B*N, H*D)

    # ---- magnitude-scaled single-query attention, unrolled over (batch, head) ----
    for b in range(B):
        kb = k_all[b * N_FEATURE:(b + 1) * N_FEATURE, :]             # (N, H*D)
        vb = v_all[b * N_FEATURE:(b + 1) * N_FEATURE, :]             # (N, H*D)
        for hh in range(H):
            lo = hh * D
            kh = kb[:, lo:lo + D]                                    # (N, D)
            vh = vb[:, lo:lo + D]                                    # (N, D)
            qh = q_all[b:b + 1, lo:lo + D]                           # (1, D)
            logits = jnp.sum(kh * qh, axis=-1, keepdims=True)        # (N, 1)  q . k_n
            mv = jnp.sum(jnp.abs(vh), axis=-1, keepdims=True) * (1.0 / D)  # L1(V)/D
            scores = mv * logits * INV_SQRT_D                        # (N, 1)
            mmax = jnp.max(scores, axis=0, keepdims=True)
            e = jnp.exp(scores - mmax)
            a = e / jnp.sum(e, axis=0, keepdims=True)                # softmax over N
            s = jnp.sum(vh * a, axis=0, keepdims=True)               # (1, D)
            out_ref[b:b + 1, lo:lo + D] = s                          # direct slice store


# ----------------- parameter packing (done ONCE, outside the hot path) -----------------
def prepare_params(params):
    return {
        "wzT": params["wz"].T,                                          # (n_encode, M)
        "whT": params["wh"].T,                                          # (n_hidden, M)
        "wqT": params["wq"].T,                                          # (n_command, H*D)
        "wkvT": jnp.concatenate([params["wk"].T, params["wv"].T], 1),   # (D, 2*H*D)
        "gamma": params["ln_gamma"].reshape(1, D),
        "beta": params["ln_beta"].reshape(1, D),
    }


# ----------------- wrapper -----------------
def feature_attn_forward(feature, hidden, command, packed):
    s_flat = pl.pallas_call(
        _feature_attn_kernel,
        out_shape=jax.ShapeDtypeStruct((B, H * D), jnp.float32),
        grid=(1,),
        in_specs=[
            pl.BlockSpec((B, N_ENCODE), lambda i: (0, 0)),
            pl.BlockSpec((B, N_HIDDEN), lambda i: (0, 0)),
            pl.BlockSpec((B, N_COMMAND), lambda i: (0, 0)),
            pl.BlockSpec((N_ENCODE, M), lambda i: (0, 0)),
            pl.BlockSpec((N_HIDDEN, M), lambda i: (0, 0)),
            pl.BlockSpec((N_COMMAND, H * D), lambda i: (0, 0)),
            pl.BlockSpec((D, 2 * H * D), lambda i: (0, 0)),
            pl.BlockSpec((1, D), lambda i: (0, 0)),
            pl.BlockSpec((1, D), lambda i: (0, 0)),
        ],
        out_specs=pl.BlockSpec((B, H * D), lambda i: (0, 0)),
        scratch_shapes=[pltpu.VMEM((B * N_FEATURE, D), jnp.float32)],
        compiler_params=pltpu.CompilerParams(dimension_semantics=("arbitrary",)),
    )(feature, hidden, command,
      packed["wzT"], packed["whT"], packed["wqT"], packed["wkvT"],
      packed["gamma"], packed["beta"])

    S = s_flat.reshape(B, H, D)     # metadata-only row-major reshape
    return S, None, None            # (study=False path of the torch module)


# ----------------- plain-JAX reference (mirrors the torch forward) -----------------
def reference_forward(feature, hidden, command, params):
    erf = jax.scipy.special.erf
    gelu = lambda x: 0.5 * x * (1.0 + erf(x / math.sqrt(2.0)))   # exact GELU (torch default)
    z = gelu(feature @ params["wz"].T)
    h = gelu(hidden @ params["wh"].T)
    y = jnp.concatenate([z, h], axis=1).reshape(B, -1, D)
    mean = jnp.mean(y, axis=-1, keepdims=True)
    var = jnp.mean((y - mean) ** 2, axis=-1, keepdims=True)
    y = (y - mean) / jnp.sqrt(var + LN_EPS) * params["ln_gamma"] + params["ln_beta"]
    Q = command @ params["wq"].T                                  # (B, H*D)
    K = jnp.transpose(y @ params["wk"].T, (0, 2, 1))              # (B, H*D, N)
    V = jnp.transpose(y @ params["wv"].T, (0, 2, 1))              # (B, H*D, N)
    Qr = Q.reshape(B, H, D, 1)
    Kr = K.reshape(B, H, D, N_FEATURE)
    Vr = V.reshape(B, H, D, N_FEATURE)
    QK = jnp.einsum("bhdn,bhdm->bhmn", Qr, Kr)                    # (B,H,N,1)
    mV = (jnp.sum(jnp.abs(Vr), axis=2) / D)[..., None]            # (B,H,N,1)
    A = jax.nn.softmax(mV * QK / math.sqrt(D), axis=2)
    S = jnp.einsum("bhnm,bhdn->bhdm", A, Vr)                      # (B,H,D,1)
    return S.reshape(B, H, D)


def xavier_uniform(key, shape):
    fan_out, fan_in = shape
    limit = math.sqrt(6.0 / (fan_in + fan_out))
    return jax.random.uniform(key, shape, jnp.float32, -limit, limit)


if __name__ == "__main__":
    key = jax.random.PRNGKey(0)
    ks = jax.random.split(key, 8)
    params = {
        "wz": xavier_uniform(ks[0], (M, N_ENCODE)),       # nn.Linear(n_encode, M)
        "wh": xavier_uniform(ks[1], (M, N_HIDDEN)),       # nn.Linear(n_hidden, M)
        "wq": xavier_uniform(ks[2], (D * H, N_COMMAND)),  # nn.Linear(n_command, D*h)
        "wk": xavier_uniform(ks[3], (D * H, D)),          # nn.Linear(D, D*h)
        "wv": xavier_uniform(ks[4], (D * H, D)),          # nn.Linear(D, D*h)
        "ln_gamma": jnp.ones((D,), jnp.float32),          # nn.LayerNorm(n_state)
        "ln_beta": jnp.zeros((D,), jnp.float32),
    }
    packed = prepare_params(params)                       # one-time weight packing

    feature = jax.random.normal(ks[5], (B, N_ENCODE), jnp.float32)
    hidden = jax.random.normal(ks[6], (B, N_HIDDEN), jnp.float32)
    command = jax.random.normal(ks[7], (B, N_COMMAND), jnp.float32)

    S, _, _ = feature_attn_forward(feature, hidden, command, packed)
    S = jax.block_until_ready(S)

    S_ref = reference_forward(feature, hidden, command, params)
    assert S.shape == (B, H, D), S.shape
    max_err = jnp.max(jnp.abs(S - S_ref))
    assert jnp.allclose(S, S_ref, rtol=1e-4, atol=1e-4), f"max abs err = {max_err}"

    print("KERNEL_OK")
</pallas_src>

<mosaic_0001>
module attributes {stable_mosaic.version = 11 : i64} {
  func.func @_feature_attn_kernel(%arg0: i32, %arg1: memref<2x16xf32, #tpu.memory_space<vmem>>, %arg2: memref<2x32xf32, #tpu.memory_space<vmem>>, %arg3: memref<2x8xf32, #tpu.memory_space<vmem>>, %arg4: memref<16x64xf32, #tpu.memory_space<vmem>>, %arg5: memref<32x64xf32, #tpu.memory_space<vmem>>, %arg6: memref<8x32xf32, #tpu.memory_space<vmem>>, %arg7: memref<16x64xf32, #tpu.memory_space<vmem>>, %arg8: memref<1x16xf32, #tpu.memory_space<vmem>>, %arg9: memref<1x16xf32, #tpu.memory_space<vmem>>, %arg10: memref<2x32xf32, #tpu.memory_space<vmem>>, %arg11: memref<16x16xf32, #tpu.memory_space<vmem>>) attributes {dimension_semantics = [#tpu.dimension_semantics<arbitrary>], iteration_bounds = array<i64: 1>, scalar_prefetch = 0 : i64, scratch_operands = 1 : i64, tpu.core_type = #tpu.core_type<tc>, window_params = [{pipeline_mode = #tpu.pipeline_mode<synchronous>, transform_indices = @transform_0, window_bounds = array<i64: 2, 16>}, {pipeline_mode = #tpu.pipeline_mode<synchronous>, transform_indices = @transform_1, window_bounds = array<i64: 2, 32>}, {pipeline_mode = #tpu.pipeline_mode<synchronous>, transform_indices = @transform_2, window_bounds = array<i64: 2, 8>}, {pipeline_mode = #tpu.pipeline_mode<synchronous>, transform_indices = @transform_3, window_bounds = array<i64: 16, 64>}, {pipeline_mode = #tpu.pipeline_mode<synchronous>, transform_indices = @transform_4, window_bounds = array<i64: 32, 64>}, {pipeline_mode = #tpu.pipeline_mode<synchronous>, transform_indices = @transform_5, window_bounds = array<i64: 8, 32>}, {pipeline_mode = #tpu.pipeline_mode<synchronous>, transform_indices = @transform_6, window_bounds = array<i64: 16, 64>}, {pipeline_mode = #tpu.pipeline_mode<synchronous>, transform_indices = @transform_7, window_bounds = array<i64: 1, 16>}, {pipeline_mode = #tpu.pipeline_mode<synchronous>, transform_indices = @transform_8, window_bounds = array<i64: 1, 16>}, {pipeline_mode = #tpu.pipeline_mode<synchronous>, transform_indices = @transform_9, window_bounds = array<i64: 2, 32>}]} {
    %c0 = arith.constant 0 : index
    %c0_0 = arith.constant 0 : index
    %0 = vector.load %arg1[%c0, %c0_0] : memref<2x16xf32, #tpu.memory_space<vmem>>, vector<2x16xf32>
    %c0_1 = arith.constant 0 : index
    %c0_2 = arith.constant 0 : index
    %1 = vector.load %arg4[%c0_1, %c0_2] : memref<16x64xf32, #tpu.memory_space<vmem>>, vector<16x64xf32>
    %cst = arith.constant dense<0.000000e+00> : vector<2x64xf32>
    %2 = tpu.matmul %0, %1, %cst {dimension_numbers = #tpu.dot_dimension_numbers<[1], [0], [0], [1], [0, 0, 1, 1], [], []>} : vector<2x16xf32>, vector<16x64xf32>, vector<2x64xf32> -> vector<2x64xf32>
    %cst_3 = arith.constant 5.000000e-01 : f32
    %3 = vector.broadcast %cst_3 : f32 to vector<2x64xf32>
    %4 = arith.mulf %3, %2 : vector<2x64xf32>
    %cst_4 = arith.constant 0.707106769 : f32
    %5 = vector.broadcast %cst_4 : f32 to vector<2x64xf32>
    %6 = arith.mulf %2, %5 : vector<2x64xf32>
    %cst_5 = arith.constant 0.000000e+00 : f32
    %7 = vector.broadcast %cst_5 : f32 to vector<2x64xf32>
    %8 = arith.cmpf oge, %6, %7 : vector<2x64xf32>
    %cst_6 = arith.constant 1.000000e+00 : f32
    %cst_7 = arith.constant -1.000000e+00 : f32
    %9 = vector.broadcast %cst_6 : f32 to vector<2x64xf32>
    %10 = vector.broadcast %cst_7 : f32 to vector<2x64xf32>
    %11 = arith.select %8, %9, %10 : vector<2x64xi1>, vector<2x64xf32>
    %12 = math.absf %6 : vector<2x64xf32>
    %cst_8 = arith.constant 0.327591091 : f32
    %13 = vector.broadcast %cst_8 : f32 to vector<2x64xf32>
    %14 = arith.mulf %13, %12 : vector<2x64xf32>
    %cst_9 = arith.constant 1.000000e+00 : f32
    %15 = vector.broadcast %cst_9 : f32 to vector<2x64xf32>
    %16 = arith.addf %15, %14 : vector<2x64xf32>
    %cst_10 = arith.constant 1.000000e+00 : f32
    %17 = vector.broadcast %cst_10 : f32 to vector<2x64xf32>
    %18 = arith.divf %17, %16 : vector<2x64xf32>
    %cst_11 = arith.constant 1.06140542 : f32
    %19 = vector.broadcast %cst_11 : f32 to vector<2x64xf32>
    %20 = arith.mulf %19, %18 : vector<2x64xf32>
    %cst_12 = arith.constant -1.45315206 : f32
    %21 = vector.broadcast %cst_12 : f32 to vector<2x64xf32>
    %22 = arith.addf %20, %21 : vector<2x64xf32>
    %23 = arith.mulf %22, %18 : vector<2x64xf32>
    %cst_13 = arith.constant 1.42141378 : f32
    %24 = vector.broadcast %cst_13 : f32 to vector<2x64xf32>
    %25 = arith.addf %23, %24 : vector<2x64xf32>
    %26 = arith.mulf %25, %18 : vector<2x64xf32>
    %cst_14 = arith.constant -0.284496725 : f32
    %27 = vector.broadcast %cst_14 : f32 to vector<2x64xf32>
    %28 = arith.addf %26, %27 : vector<2x64xf32>
    %29 = arith.mulf %28, %18 : vector<2x64xf32>
    %cst_15 = arith.constant 0.254829586 : f32
    %30 = vector.broadcast %cst_15 : f32 to vector<2x64xf32>
    %31 = arith.addf %29, %30 : vector<2x64xf32>
    %32 = arith.mulf %31, %18 : vector<2x64xf32>
    %cst_16 = arith.constant 0.000000e+00 : f32
    %33 = vector.broadcast %cst_16 : f32 to vector<2x64xf32>
    %34 = arith.subf %33, %12 : vector<2x64xf32>
    %35 = arith.mulf %34, %12 : vector<2x64xf32>
    %36 = math.exp %35 : vector<2x64xf32>
    %37 = arith.mulf %32, %36 : vector<2x64xf32>
    %cst_17 = arith.constant 1.000000e+00 : f32
    %38 = vector.broadcast %cst_17 : f32 to vector<2x64xf32>
    %39 = arith.subf %38, %37 : vector<2x64xf32>
    %40 = arith.mulf %11, %39 : vector<2x64xf32>
    %cst_18 = arith.constant 1.000000e+00 : f32
    %41 = vector.broadcast %cst_18 : f32 to vector<2x64xf32>
    %42 = arith.addf %41, %40 : vector<2x64xf32>
    %43 = arith.mulf %4, %42 : vector<2x64xf32>
    %c0_19 = arith.constant 0 : index
    %c0_20 = arith.constant 0 : index
    %44 = vector.load %arg2[%c0_19, %c0_20] : memref<2x32xf32, #tpu.memory_space<vmem>>, vector<2x32xf32>
    %c0_21 = arith.constant 0 : index
    %c0_22 = arith.constant 0 : index
    %45 = vector.load %arg5[%c0_21, %c0_22] : memref<32x64xf32, #tpu.memory_space<vmem>>, vector<32x64xf32>
    %cst_23 = arith.constant dense<0.000000e+00> : vector<2x64xf32>
    %46 = tpu.matmul %44, %45, %cst_23 {dimension_numbers = #tpu.dot_dimension_numbers<[1], [0], [0], [1], [0, 0, 1, 1], [], []>} : vector<2x32xf32>, vector<32x64xf32>, vector<2x64xf32> -> vector<2x64xf32>
    %cst_24 = arith.constant 5.000000e-01 : f32
    %47 = vector.broadcast %cst_24 : f32 to vector<2x64xf32>
    %48 = arith.mulf %47, %46 : vector<2x64xf32>
    %cst_25 = arith.constant 0.707106769 : f32
    %49 = vector.broadcast %cst_25 : f32 to vector<2x64xf32>
    %50 = arith.mulf %46, %49 : vector<2x64xf32>
    %cst_26 = arith.constant 0.000000e+00 : f32
    %51 = vector.broadcast %cst_26 : f32 to vector<2x64xf32>
    %52 = arith.cmpf oge, %50, %51 : vector<2x64xf32>
    %cst_27 = arith.constant 1.000000e+00 : f32
    %cst_28 = arith.constant -1.000000e+00 : f32
    %53 = vector.broadcast %cst_27 : f32 to vector<2x64xf32>
    %54 = vector.broadcast %cst_28 : f32 to vector<2x64xf32>
    %55 = arith.select %52, %53, %54 : vector<2x64xi1>, vector<2x64xf32>
    %56 = math.absf %50 : vector<2x64xf32>
    %cst_29 = arith.constant 0.327591091 : f32
    %57 = vector.broadcast %cst_29 : f32 to vector<2x64xf32>
    %58 = arith.mulf %57, %56 : vector<2x64xf32>
    %cst_30 = arith.constant 1.000000e+00 : f32
    %59 = vector.broadcast %cst_30 : f32 to vector<2x64xf32>
    %60 = arith.addf %59, %58 : vector<2x64xf32>
    %cst_31 = arith.constant 1.000000e+00 : f32
    %61 = vector.broadcast %cst_31 : f32 to vector<2x64xf32>
    %62 = arith.divf %61, %60 : vector<2x64xf32>
    %cst_32 = arith.constant 1.06140542 : f32
    %63 = vector.broadcast %cst_32 : f32 to vector<2x64xf32>
    %64 = arith.mulf %63, %62 : vector<2x64xf32>
    %cst_33 = arith.constant -1.45315206 : f32
    %65 = vector.broadcast %cst_33 : f32 to vector<2x64xf32>
    %66 = arith.addf %64, %65 : vector<2x64xf32>
    %67 = arith.mulf %66, %62 : vector<2x64xf32>
    %cst_34 = arith.constant 1.42141378 : f32
    %68 = vector.broadcast %cst_34 : f32 to vector<2x64xf32>
    %69 = arith.addf %67, %68 : vector<2x64xf32>
    %70 = arith.mulf %69, %62 : vector<2x64xf32>
    %cst_35 = arith.constant -0.284496725 : f32
    %71 = vector.broadcast %cst_35 : f32 to vector<2x64xf32>
    %72 = arith.addf %70, %71 : vector<2x64xf32>
    %73 = arith.mulf %72, %62 : vector<2x64xf32>
    %cst_36 = arith.constant 0.254829586 : f32
    %74 = vector.broadcast %cst_36 : f32 to vector<2x64xf32>
    %75 = arith.addf %73, %74 : vector<2x64xf32>
    %76 = arith.mulf %75, %62 : vector<2x64xf32>
    %cst_37 = arith.constant 0.000000e+00 : f32
    %77 = vector.broadcast %cst_37 : f32 to vector<2x64xf32>
    %78 = arith.subf %77, %56 : vector<2x64xf32>
    %79 = arith.mulf %78, %56 : vector<2x64xf32>
    %80 = math.exp %79 : vector<2x64xf32>
    %81 = arith.mulf %76, %80 : vector<2x64xf32>
    %cst_38 = arith.constant 1.000000e+00 : f32
    %82 = vector.broadcast %cst_38 : f32 to vector<2x64xf32>
    %83 = arith.subf %82, %81 : vector<2x64xf32>
    %84 = arith.mulf %55, %83 : vector<2x64xf32>
    %cst_39 = arith.constant 1.000000e+00 : f32
    %85 = vector.broadcast %cst_39 : f32 to vector<2x64xf32>
    %86 = arith.addf %85, %84 : vector<2x64xf32>
    %87 = arith.mulf %48, %86 : vector<2x64xf32>
    %88 = vector.extract_strided_slice %43 {offsets = [0, 0], sizes = [1, 16], strides = [1, 1]} : vector<2x64xf32> to vector<1x16xf32>
    %c0_40 = arith.constant 0 : index
    %c0_41 = arith.constant 0 : index
    %89 = vector.load %arg11[%c0_40, %c0_41] : memref<16x16xf32, #tpu.memory_space<vmem>>, vector<1x16xf32>
    tpu.vector_store %arg11[%c0_40, %c0_41], %88 {strides = array<i32>} : memref<16x16xf32, #tpu.memory_space<vmem>>, vector<1x16xf32>,
    %90 = vector.extract_strided_slice %43 {offsets = [0, 16], sizes = [1, 16], strides = [1, 1]} : vector<2x64xf32> to vector<1x16xf32>
    %c1 = arith.constant 1 : index
    %c0_42 = arith.constant 0 : index
    %91 = vector.load %arg11[%c1, %c0_42] : memref<16x16xf32, #tpu.memory_space<vmem>>, vector<1x16xf32>
    tpu.vector_store %arg11[%c1, %c0_42], %90 {strides = array<i32>} : memref<16x16xf32, #tpu.memory_space<vmem>>, vector<1x16xf32>,
    %92 = vector.extract_strided_slice %43 {offsets = [0, 32], sizes = [1, 16], strides = [1, 1]} : vector<2x64xf32> to vector<1x16xf32>
    %c2 = arith.constant 2 : index
    %c0_43 = arith.constant 0 : index
    %93 = vector.load %arg11[%c2, %c0_43] : memref<16x16xf32, #tpu.memory_space<vmem>>, vector<1x16xf32>
    tpu.vector_store %arg11[%c2, %c0_43], %92 {strides = array<i32>} : memref<16x16xf32, #tpu.memory_space<vmem>>, vector<1x16xf32>,
    %94 = vector.extract_strided_slice %43 {offsets = [0, 48], sizes = [1, 16], strides = [1, 1]} : vector<2x64xf32> to vector<1x16xf32>
    %c3 = arith.constant 3 : index
    %c0_44 = arith.constant 0 : index
    %95 = vector.load %arg11[%c3, %c0_44] : memref<16x16xf32, #tpu.memory_space<vmem>>, vector<1x16xf32>
    tpu.vector_store %arg11[%c3, %c0_44], %94 {strides = array<i32>} : memref<16x16xf32, #tpu.memory_space<vmem>>, vector<1x16xf32>,
    %96 = vector.extract_strided_slice %87 {offsets = [0, 0], sizes = [1, 16], strides = [1, 1]} : vector<2x64xf32> to vector<1x16xf32>
    %c4 = arith.constant 4 : index
    %c0_45 = arith.constant 0 : index
    %97 = vector.load %arg11[%c4, %c0_45] : memref<16x16xf32, #tpu.memory_space<vmem>>, vector<1x16xf32>
    tpu.vector_store %arg11[%c4, %c0_45], %96 {strides = array<i32>} : memref<16x16xf32, #tpu.memory_space<vmem>>, vector<1x16xf32>,
    %98 = vector.extract_strided_slice %87 {offsets = [0, 16], sizes = [1, 16], strides = [1, 1]} : vector<2x64xf32> to vector<1x16xf32>
    %c5 = arith.constant 5 : index
    %c0_46 = arith.constant 0 : index
    %99 = vector.load %arg11[%c5, %c0_46] : memref<16x16xf32, #tpu.memory_space<vmem>>, vector<1x16xf32>
    tpu.vector_store %arg11[%c5, %c0_46], %98 {strides = array<i32>} : memref<16x16xf32, #tpu.memory_space<vmem>>, vector<1x16xf32>,
    %100 = vector.extract_strided_slice %87 {offsets = [0, 32], sizes = [1, 16], strides = [1, 1]} : vector<2x64xf32> to vector<1x16xf32>
    %c6 = arith.constant 6 : index
    %c0_47 = arith.constant 0 : index
    %101 = vector.load %arg11[%c6, %c0_47] : memref<16x16xf32, #tpu.memory_space<vmem>>, vector<1x16xf32>
    tpu.vector_store %arg11[%c6, %c0_47], %100 {strides = array<i32>} : memref<16x16xf32, #tpu.memory_space<vmem>>, vector<1x16xf32>,
    %102 = vector.extract_strided_slice %87 {offsets = [0, 48], sizes = [1, 16], strides = [1, 1]} : vector<2x64xf32> to vector<1x16xf32>
    %c7 = arith.constant 7 : index
    %c0_48 = arith.constant 0 : index
    %103 = vector.load %arg11[%c7, %c0_48] : memref<16x16xf32, #tpu.memory_space<vmem>>, vector<1x16xf32>
    tpu.vector_store %arg11[%c7, %c0_48], %102 {strides = array<i32>} : memref<16x16xf32, #tpu.memory_space<vmem>>, vector<1x16xf32>,
    %104 = vector.extract_strided_slice %43 {offsets = [1, 0], sizes = [1, 16], strides = [1, 1]} : vector<2x64xf32> to vector<1x16xf32>
    %c8 = arith.constant 8 : index
    %c0_49 = arith.constant 0 : index
    %105 = vector.load %arg11[%c8, %c0_49] : memref<16x16xf32, #tpu.memory_space<vmem>>, vector<1x16xf32>
    tpu.vector_store %arg11[%c8, %c0_49], %104 {strides = array<i32>} : memref<16x16xf32, #tpu.memory_space<vmem>>, vector<1x16xf32>,
    %106 = vector.extract_strided_slice %43 {offsets = [1, 16], sizes = [1, 16], strides = [1, 1]} : vector<2x64xf32> to vector<1x16xf32>
    %c9 = arith.constant 9 : index
    %c0_50 = arith.constant 0 : index
    %107 = vector.load %arg11[%c9, %c0_50] : memref<16x16xf32, #tpu.memory_space<vmem>>, vector<1x16xf32>
    tpu.vector_store %arg11[%c9, %c0_50], %106 {strides = array<i32>} : memref<16x16xf32, #tpu.memory_space<vmem>>, vector<1x16xf32>,
    %108 = vector.extract_strided_slice %43 {offsets = [1, 32], sizes = [1, 16], strides = [1, 1]} : vector<2x64xf32> to vector<1x16xf32>
    %c10 = arith.constant 10 : index
    %c0_51 = arith.constant 0 : index
    %109 = vector.load %arg11[%c10, %c0_51] : memref<16x16xf32, #tpu.memory_space<vmem>>, vector<1x16xf32>
    tpu.vector_store %arg11[%c10, %c0_51], %108 {strides = array<i32>} : memref<16x16xf32, #tpu.memory_space<vmem>>, vector<1x16xf32>,
    %110 = vector.extract_strided_slice %43 {offsets = [1, 48], sizes = [1, 16], strides = [1, 1]} : vector<2x64xf32> to vector<1x16xf32>
    %c11 = arith.constant 11 : index
    %c0_52 = arith.constant 0 : index
    %111 = vector.load %arg11[%c11, %c0_52] : memref<16x16xf32, #tpu.memory_space<vmem>>, vector<1x16xf32>
    tpu.vector_store %arg11[%c11, %c0_52], %110 {strides = array<i32>} : memref<16x16xf32, #tpu.memory_space<vmem>>, vector<1x16xf32>,
    %112 = vector.extract_strided_slice %87 {offsets = [1, 0], sizes = [1, 16], strides = [1, 1]} : vector<2x64xf32> to vector<1x16xf32>
    %c12 = arith.constant 12 : index
    %c0_53 = arith.constant 0 : index
    %113 = vector.load %arg11[%c12, %c0_53] : memref<16x16xf32, #tpu.memory_space<vmem>>, vector<1x16xf32>
    tpu.vector_store %arg11[%c12, %c0_53], %112 {strides = array<i32>} : memref<16x16xf32, #tpu.memory_space<vmem>>, vector<1x16xf32>,
    %114 = vector.extract_strided_slice %87 {offsets = [1, 16], sizes = [1, 16], strides = [1, 1]} : vector<2x64xf32> to vector<1x16xf32>
    %c13 = arith.constant 13 : index
    %c0_54 = arith.constant 0 : index
    %115 = vector.load %arg11[%c13, %c0_54] : memref<16x16xf32, #tpu.memory_space<vmem>>, vector<1x16xf32>
    tpu.vector_store %arg11[%c13, %c0_54], %114 {strides = array<i32>} : memref<16x16xf32, #tpu.memory_space<vmem>>, vector<1x16xf32>,
    %116 = vector.extract_strided_slice %87 {offsets = [1, 32], sizes = [1, 16], strides = [1, 1]} : vector<2x64xf32> to vector<1x16xf32>
    %c14 = arith.constant 14 : index
    %c0_55 = arith.constant 0 : index
    %117 = vector.load %arg11[%c14, %c0_55] : memref<16x16xf32, #tpu.memory_space<vmem>>, vector<1x16xf32>
    tpu.vector_store %arg11[%c14, %c0_55], %116 {strides = array<i32>} : memref<16x16xf32, #tpu.memory_space<vmem>>, vector<1x16xf32>,
    %118 = vector.extract_strided_slice %87 {offsets = [1, 48], sizes = [1, 16], strides = [1, 1]} : vector<2x64xf32> to vector<1x16xf32>
    %c15 = arith.constant 15 : index
    %c0_56 = arith.constant 0 : index
    %119 = vector.load %arg11[%c15, %c0_56] : memref<16x16xf32, #tpu.memory_space<vmem>>, vector<1x16xf32>
    tpu.vector_store %arg11[%c15, %c0_56], %118 {strides = array<i32>} : memref<16x16xf32, #tpu.memory_space<vmem>>, vector<1x16xf32>,
    %c0_57 = arith.constant 0 : index
    %c0_58 = arith.constant 0 : index
    %120 = vector.load %arg11[%c0_57, %c0_58] : memref<16x16xf32, #tpu.memory_space<vmem>>, vector<16x16xf32>
    %cst_59 = arith.constant dense<0.000000e+00> : vector<16xf32>
    %121 = vector.multi_reduction <add>, %120, %cst_59 [1] : vector<16x16xf32> to vector<16xf32>
    %122 = vector.shape_cast %121 : vector<16xf32> to vector<16x1xf32>
    %cst_60 = arith.constant 1.600000e+01 : f32
    %123 = vector.broadcast %cst_60 : f32 to vector<16x1xf32>
    %124 = arith.divf %122, %123 : vector<16x1xf32>
    %125 = vector.broadcast %124 : vector<16x1xf32> to vector<16x16xf32>
    %126 = arith.subf %120, %125 : vector<16x16xf32>
    %127 = arith.mulf %126, %126 : vector<16x16xf32>
    %cst_61 = arith.constant dense<0.000000e+00> : vector<16xf32>
    %128 = vector.multi_reduction <add>, %127, %cst_61 [1] : vector<16x16xf32> to vector<16xf32>
    %129 = vector.shape_cast %128 : vector<16xf32> to vector<16x1xf32>
    %cst_62 = arith.constant 1.600000e+01 : f32
    %130 = vector.broadcast %cst_62 : f32 to vector<16x1xf32>
    %131 = arith.divf %129, %130 : vector<16x1xf32>
    %132 = vector.broadcast %124 : vector<16x1xf32> to vector<16x16xf32>
    %133 = arith.subf %120, %132 : vector<16x16xf32>
    %cst_63 = arith.constant 9.99999974E-6 : f32
    %134 = vector.broadcast %cst_63 : f32 to vector<16x1xf32>
    %135 = arith.addf %131, %134 : vector<16x1xf32>
    %136 = math.rsqrt %135 : vector<16x1xf32>
    %137 = vector.broadcast %136 : vector<16x1xf32> to vector<16x16xf32>
    %138 = arith.mulf %133, %137 : vector<16x16xf32>
    %c0_64 = arith.constant 0 : index
    %c0_65 = arith.constant 0 : index
    %139 = vector.load %arg8[%c0_64, %c0_65] : memref<1x16xf32, #tpu.memory_space<vmem>>, vector<1x16xf32>
    %140 = vector.broadcast %139 : vector<1x16xf32> to vector<16x16xf32>
    %141 = arith.mulf %138, %140 : vector<16x16xf32>
    %c0_66 = arith.constant 0 : index
    %c0_67 = arith.constant 0 : index
    %142 = vector.load %arg9[%c0_66, %c0_67] : memref<1x16xf32, #tpu.memory_space<vmem>>, vector<1x16xf32>
    %143 = vector.broadcast %142 : vector<1x16xf32> to vector<16x16xf32>
    %144 = arith.addf %141, %143 : vector<16x16xf32>
    %c0_68 = arith.constant 0 : index
    %c0_69 = arith.constant 0 : index
    %145 = vector.load %arg3[%c0_68, %c0_69] : memref<2x8xf32, #tpu.memory_space<vmem>>, vector<2x8xf32>
    %c0_70 = arith.constant 0 : index
    %c0_71 = arith.constant 0 : index
    %146 = vector.load %arg6[%c0_70, %c0_71] : memref<8x32xf32, #tpu.memory_space<vmem>>, vector<8x32xf32>
    %cst_72 = arith.constant dense<0.000000e+00> : vector<2x32xf32>
    %147 = tpu.matmul %145, %146, %cst_72 {dimension_numbers = #tpu.dot_dimension_numbers<[1], [0], [0], [1], [0, 0, 1, 1], [], []>} : vector<2x8xf32>, vector<8x32xf32>, vector<2x32xf32> -> vector<2x32xf32>
    %c0_73 = arith.constant 0 : index
    %c0_74 = arith.constant 0 : index
    %148 = vector.load %arg7[%c0_73, %c0_74] : memref<16x64xf32, #tpu.memory_space<vmem>>, vector<16x64xf32>
    %cst_75 = arith.constant dense<0.000000e+00> : vector<16x64xf32>
    %149 = tpu.matmul %144, %148, %cst_75 {dimension_numbers = #tpu.dot_dimension_numbers<[1], [0], [0], [1], [0, 0, 1, 1], [], []>} : vector<16x16xf32>, vector<16x64xf32>, vector<16x64xf32> -> vector<16x64xf32>
    %150 = vector.extract_strided_slice %149 {offsets = [0, 0], sizes = [16, 32], strides = [1, 1]} : vector<16x64xf32> to vector<16x32xf32>
    %151 = vector.extract_strided_slice %149 {offsets = [0, 32], sizes = [16, 32], strides = [1, 1]} : vector<16x64xf32> to vector<16x32xf32>
    %152 = vector.extract_strided_slice %150 {offsets = [0, 0], sizes = [8, 32], strides = [1, 1]} : vector<16x32xf32> to vector<8x32xf32>
    %153 = vector.extract_strided_slice %151 {offsets = [0, 0], sizes = [8, 32], strides = [1, 1]} : vector<16x32xf32> to vector<8x32xf32>
    %154 = vector.extract_strided_slice %152 {offsets = [0, 0], sizes = [8, 16], strides = [1, 1]} : vector<8x32xf32> to vector<8x16xf32>
    %155 = vector.extract_strided_slice %153 {offsets = [0, 0], sizes = [8, 16], strides = [1, 1]} : vector<8x32xf32> to vector<8x16xf32>
    %156 = vector.extract_strided_slice %147 {offsets = [0, 0], sizes = [1, 16], strides = [1, 1]} : vector<2x32xf32> to vector<1x16xf32>
    %157 = vector.broadcast %156 : vector<1x16xf32> to vector<8x16xf32>
    %158 = arith.mulf %154, %157 : vector<8x16xf32>
    %cst_76 = arith.constant dense<0.000000e+00> : vector<8xf32>
    %159 = vector.multi_reduction <add>, %158, %cst_76 [1] : vector<8x16xf32> to vector<8xf32>
    %160 = vector.shape_cast %159 : vector<8xf32> to vector<8x1xf32>
    %161 = math.absf %155 : vector<8x16xf32>
    %cst_77 = arith.constant dense<0.000000e+00> : vector<8xf32>
    %162 = vector.multi_reduction <add>, %161, %cst_77 [1] : vector<8x16xf32> to vector<8xf32>
    %163 = vector.shape_cast %162 : vector<8xf32> to vector<8x1xf32>
    %cst_78 = arith.constant 6.250000e-02 : f32
    %164 = vector.broadcast %cst_78 : f32 to vector<8x1xf32>
    %165 = arith.mulf %163, %164 : vector<8x1xf32>
    %166 = arith.mulf %165, %160 : vector<8x1xf32>
    %cst_79 = arith.constant 2.500000e-01 : f32
    %167 = vector.broadcast %cst_79 : f32 to vector<8x1xf32>
    %168 = arith.mulf %166, %167 : vector<8x1xf32>
    %cst_80 = arith.constant dense<0xFF800000> : vector<1xf32>
    %169 = vector.multi_reduction <maximumf>, %168, %cst_80 [0] : vector<8x1xf32> to vector<1xf32>
    %170 = vector.shape_cast %169 : vector<1xf32> to vector<1x1xf32>
    %171 = vector.broadcast %170 : vector<1x1xf32> to vector<8x1xf32>
    %172 = arith.subf %168, %171 : vector<8x1xf32>
    %173 = math.exp %172 : vector<8x1xf32>
    %cst_81 = arith.constant dense<0.000000e+00> : vector<1xf32>
    %174 = vector.multi_reduction <add>, %173, %cst_81 [0] : vector<8x1xf32> to vector<1xf32>
    %175 = vector.shape_cast %174 : vector<1xf32> to vector<1x1xf32>
    %176 = vector.broadcast %175 : vector<1x1xf32> to vector<8x1xf32>
    %177 = arith.divf %173, %176 : vector<8x1xf32>
    %178 = vector.broadcast %177 : vector<8x1xf32> to vector<8x16xf32>
    %179 = arith.mulf %155, %178 : vector<8x16xf32>
    %cst_82 = arith.constant dense<0.000000e+00> : vector<16xf32>
    %180 = vector.multi_reduction <add>, %179, %cst_82 [0] : vector<8x16xf32> to vector<16xf32>
    %181 = vector.shape_cast %180 : vector<16xf32> to vector<1x16xf32>
    %c0_83 = arith.constant 0 : index
    %c0_84 = arith.constant 0 : index
    %182 = vector.load %arg10[%c0_83, %c0_84] : memref<2x32xf32, #tpu.memory_space<vmem>>, vector<1x16xf32>
    tpu.vector_store %arg10[%c0_83, %c0_84], %181 {strides = array<i32>} : memref<2x32xf32, #tpu.memory_space<vmem>>, vector<1x16xf32>,
    %183 = vector.extract_strided_slice %152 {offsets = [0, 16], sizes = [8, 16], strides = [1, 1]} : vector<8x32xf32> to vector<8x16xf32>
    %184 = vector.extract_strided_slice %153 {offsets = [0, 16], sizes = [8, 16], strides = [1, 1]} : vector<8x32xf32> to vector<8x16xf32>
    %185 = vector.extract_strided_slice %147 {offsets = [0, 16], sizes = [1, 16], strides = [1, 1]} : vector<2x32xf32> to vector<1x16xf32>
    %186 = vector.broadcast %185 : vector<1x16xf32> to vector<8x16xf32>
    %187 = arith.mulf %183, %186 : vector<8x16xf32>
    %cst_85 = arith.constant dense<0.000000e+00> : vector<8xf32>
    %188 = vector.multi_reduction <add>, %187, %cst_85 [1] : vector<8x16xf32> to vector<8xf32>
    %189 = vector.shape_cast %188 : vector<8xf32> to vector<8x1xf32>
    %190 = math.absf %184 : vector<8x16xf32>
    %cst_86 = arith.constant dense<0.000000e+00> : vector<8xf32>
    %191 = vector.multi_reduction <add>, %190, %cst_86 [1] : vector<8x16xf32> to vector<8xf32>
    %192 = vector.shape_cast %191 : vector<8xf32> to vector<8x1xf32>
    %cst_87 = arith.constant 6.250000e-02 : f32
    %193 = vector.broadcast %cst_87 : f32 to vector<8x1xf32>
    %194 = arith.mulf %192, %193 : vector<8x1xf32>
    %195 = arith.mulf %194, %189 : vector<8x1xf32>
    %cst_88 = arith.constant 2.500000e-01 : f32
    %196 = vector.broadcast %cst_88 : f32 to vector<8x1xf32>
    %197 = arith.mulf %195, %196 : vector<8x1xf32>
    %cst_89 = arith.constant dense<0xFF800000> : vector<1xf32>
    %198 = vector.multi_reduction <maximumf>, %197, %cst_89 [0] : vector<8x1xf32> to vector<1xf32>
    %199 = vector.shape_cast %198 : vector<1xf32> to vector<1x1xf32>
    %200 = vector.broadcast %199 : vector<1x1xf32> to vector<8x1xf32>
    %201 = arith.subf %197, %200 : vector<8x1xf32>
    %202 = math.exp %201 : vector<8x1xf32>
    %cst_90 = arith.constant dense<0.000000e+00> : vector<1xf32>
    %203 = vector.multi_reduction <add>, %202, %cst_90 [0] : vector<8x1xf32> to vector<1xf32>
    %204 = vector.shape_cast %203 : vector<1xf32> to vector<1x1xf32>
    %205 = vector.broadcast %204 : vector<1x1xf32> to vector<8x1xf32>
    %206 = arith.divf %202, %205 : vector<8x1xf32>
    %207 = vector.broadcast %206 : vector<8x1xf32> to vector<8x16xf32>
    %208 = arith.mulf %184, %207 : vector<8x16xf32>
    %cst_91 = arith.constant dense<0.000000e+00> : vector<16xf32>
    %209 = vector.multi_reduction <add>, %208, %cst_91 [0] : vector<8x16xf32> to vector<16xf32>
    %210 = vector.shape_cast %209 : vector<16xf32> to vector<1x16xf32>
    %c0_92 = arith.constant 0 : index
    %c16 = arith.constant 16 : index
    %211 = vector.load %arg10[%c0_92, %c16] : memref<2x32xf32, #tpu.memory_space<vmem>>, vector<1x16xf32>
    tpu.vector_store %arg10[%c0_92, %c16], %210 {strides = array<i32>} : memref<2x32xf32, #tpu.memory_space<vmem>>, vector<1x16xf32>,
    %212 = vector.extract_strided_slice %150 {offsets = [8, 0], sizes = [8, 32], strides = [1, 1]} : vector<16x32xf32> to vector<8x32xf32>
    %213 = vector.extract_strided_slice %151 {offsets = [8, 0], sizes = [8, 32], strides = [1, 1]} : vector<16x32xf32> to vector<8x32xf32>
    %214 = vector.extract_strided_slice %212 {offsets = [0, 0], sizes = [8, 16], strides = [1, 1]} : vector<8x32xf32> to vector<8x16xf32>
    %215 = vector.extract_strided_slice %213 {offsets = [0, 0], sizes = [8, 16], strides = [1, 1]} : vector<8x32xf32> to vector<8x16xf32>
    %216 = vector.extract_strided_slice %147 {offsets = [1, 0], sizes = [1, 16], strides = [1, 1]} : vector<2x32xf32> to vector<1x16xf32>
    %217 = vector.broadcast %216 : vector<1x16xf32> to vector<8x16xf32>
    %218 = arith.mulf %214, %217 : vector<8x16xf32>
    %cst_93 = arith.constant dense<0.000000e+00> : vector<8xf32>
    %219 = vector.multi_reduction <add>, %218, %cst_93 [1] : vector<8x16xf32> to vector<8xf32>
    %220 = vector.shape_cast %219 : vector<8xf32> to vector<8x1xf32>
    %221 = math.absf %215 : vector<8x16xf32>
    %cst_94 = arith.constant dense<0.000000e+00> : vector<8xf32>
    %222 = vector.multi_reduction <add>, %221, %cst_94 [1] : vector<8x16xf32> to vector<8xf32>
    %223 = vector.shape_cast %222 : vector<8xf32> to vector<8x1xf32>
    %cst_95 = arith.constant 6.250000e-02 : f32
    %224 = vector.broadcast %cst_95 : f32 to vector<8x1xf32>
    %225 = arith.mulf %223, %224 : vector<8x1xf32>
    %226 = arith.mulf %225, %220 : vector<8x1xf32>
    %cst_96 = arith.constant 2.500000e-01 : f32
    %227 = vector.broadcast %cst_96 : f32 to vector<8x1xf32>
    %228 = arith.mulf %226, %227 : vector<8x1xf32>
    %cst_97 = arith.constant dense<0xFF800000> : vector<1xf32>
    %229 = vector.multi_reduction <maximumf>, %228, %cst_97 [0] : vector<8x1xf32> to vector<1xf32>
    %230 = vector.shape_cast %229 : vector<1xf32> to vector<1x1xf32>
    %231 = vector.broadcast %230 : vector<1x1xf32> to vector<8x1xf32>
    %232 = arith.subf %228, %231 : vector<8x1xf32>
    %233 = math.exp %232 : vector<8x1xf32>
    %cst_98 = arith.constant dense<0.000000e+00> : vector<1xf32>
    %234 = vector.multi_reduction <add>, %233, %cst_98 [0] : vector<8x1xf32> to vector<1xf32>
    %235 = vector.shape_cast %234 : vector<1xf32> to vector<1x1xf32>
    %236 = vector.broadcast %235 : vector<1x1xf32> to vector<8x1xf32>
    %237 = arith.divf %233, %236 : vector<8x1xf32>
    %238 = vector.broadcast %237 : vector<8x1xf32> to vector<8x16xf32>
    %239 = arith.mulf %215, %238 : vector<8x16xf32>
    %cst_99 = arith.constant dense<0.000000e+00> : vector<16xf32>
    %240 = vector.multi_reduction <add>, %239, %cst_99 [0] : vector<8x16xf32> to vector<16xf32>
    %241 = vector.shape_cast %240 : vector<16xf32> to vector<1x16xf32>
    %c1_100 = arith.constant 1 : index
    %c0_101 = arith.constant 0 : index
    %242 = vector.load %arg10[%c1_100, %c0_101] : memref<2x32xf32, #tpu.memory_space<vmem>>, vector<1x16xf32>
    tpu.vector_store %arg10[%c1_100, %c0_101], %241 {strides = array<i32>} : memref<2x32xf32, #tpu.memory_space<vmem>>, vector<1x16xf32>,
    %243 = vector.extract_strided_slice %212 {offsets = [0, 16], sizes = [8, 16], strides = [1, 1]} : vector<8x32xf32> to vector<8x16xf32>
    %244 = vector.extract_strided_slice %213 {offsets = [0, 16], sizes = [8, 16], strides = [1, 1]} : vector<8x32xf32> to vector<8x16xf32>
    %245 = vector.extract_strided_slice %147 {offsets = [1, 16], sizes = [1, 16], strides = [1, 1]} : vector<2x32xf32> to vector<1x16xf32>
    %246 = vector.broadcast %245 : vector<1x16xf32> to vector<8x16xf32>
    %247 = arith.mulf %243, %246 : vector<8x16xf32>
    %cst_102 = arith.constant dense<0.000000e+00> : vector<8xf32>
    %248 = vector.multi_reduction <add>, %247, %cst_102 [1] : vector<8x16xf32> to vector<8xf32>
    %249 = vector.shape_cast %248 : vector<8xf32> to vector<8x1xf32>
    %250 = math.absf %244 : vector<8x16xf32>
    %cst_103 = arith.constant dense<0.000000e+00> : vector<8xf32>
    %251 = vector.multi_reduction <add>, %250, %cst_103 [1] : vector<8x16xf32> to vector<8xf32>
    %252 = vector.shape_cast %251 : vector<8xf32> to vector<8x1xf32>
    %cst_104 = arith.constant 6.250000e-02 : f32
    %253 = vector.broadcast %cst_104 : f32 to vector<8x1xf32>
    %254 = arith.mulf %252, %253 : vector<8x1xf32>
    %255 = arith.mulf %254, %249 : vector<8x1xf32>
    %cst_105 = arith.constant 2.500000e-01 : f32
    %256 = vector.broadcast %cst_105 : f32 to vector<8x1xf32>
    %257 = arith.mulf %255, %256 : vector<8x1xf32>
    %cst_106 = arith.constant dense<0xFF800000> : vector<1xf32>
    %258 = vector.multi_reduction <maximumf>, %257, %cst_106 [0] : vector<8x1xf32> to vector<1xf32>
    %259 = vector.shape_cast %258 : vector<1xf32> to vector<1x1xf32>
    %260 = vector.broadcast %259 : vector<1x1xf32> to vector<8x1xf32>
    %261 = arith.subf %257, %260 : vector<8x1xf32>
    %262 = math.exp %261 : vector<8x1xf32>
    %cst_107 = arith.constant dense<0.000000e+00> : vector<1xf32>
    %263 = vector.multi_reduction <add>, %262, %cst_107 [0] : vector<8x1xf32> to vector<1xf32>
    %264 = vector.shape_cast %263 : vector<1xf32> to vector<1x1xf32>
    %265 = vector.broadcast %264 : vector<1x1xf32> to vector<8x1xf32>
    %266 = arith.divf %262, %265 : vector<8x1xf32>
    %267 = vector.broadcast %266 : vector<8x1xf32> to vector<8x16xf32>
    %268 = arith.mulf %244, %267 : vector<8x16xf32>
    %cst_108 = arith.constant dense<0.000000e+00> : vector<16xf32>
    %269 = vector.multi_reduction <add>, %268, %cst_108 [0] : vector<8x16xf32> to vector<16xf32>
    %270 = vector.shape_cast %269 : vector<16xf32> to vector<1x16xf32>
    %c1_109 = arith.constant 1 : index
    %c16_110 = arith.constant 16 : index
    %271 = vector.load %arg10[%c1_109, %c16_110] : memref<2x32xf32, #tpu.memory_space<vmem>>, vector<1x16xf32>
    tpu.vector_store %arg10[%c1_109, %c16_110], %270 {strides = array<i32>} : memref<2x32xf32, #tpu.memory_space<vmem>>, vector<1x16xf32>,
    return
  }
  func.func @transform_0(%arg0: i32) -> (i32, i32) {
    %c0_i32 = arith.constant 0 : i32
    %c0_i32_0 = arith.constant 0 : i32
    %c0_i32_1 = arith.constant 0 : i32
    return %c0_i32, %c0_i32_0 : i32, i32
  }
  func.func @transform_1(%arg0: i32) -> (i32, i32) {
    %c0_i32 = arith.constant 0 : i32
    %c0_i32_0 = arith.constant 0 : i32
    %c0_i32_1 = arith.constant 0 : i32
    return %c0_i32, %c0_i32_0 : i32, i32
  }
  func.func @transform_2(%arg0: i32) -> (i32, i32) {
    %c0_i32 = arith.constant 0 : i32
    %c0_i32_0 = arith.constant 0 : i32
    %c0_i32_1 = arith.constant 0 : i32
    return %c0_i32, %c0_i32_0 : i32, i32
  }
  func.func @transform_3(%arg0: i32) -> (i32, i32) {
    %c0_i32 = arith.constant 0 : i32
    %c0_i32_0 = arith.constant 0 : i32
    %c0_i32_1 = arith.constant 0 : i32
    return %c0_i32, %c0_i32_0 : i32, i32
  }
  func.func @transform_4(%arg0: i32) -> (i32, i32) {
    %c0_i32 = arith.constant 0 : i32
    %c0_i32_0 = arith.constant 0 : i32
    %c0_i32_1 = arith.constant 0 : i32
    return %c0_i32, %c0_i32_0 : i32, i32
  }
  func.func @transform_5(%arg0: i32) -> (i32, i32) {
    %c0_i32 = arith.constant 0 : i32
    %c0_i32_0 = arith.constant 0 : i32
    %c0_i32_1 = arith.constant 0 : i32
    return %c0_i32, %c0_i32_0 : i32, i32
  }
  func.func @transform_6(%arg0: i32) -> (i32, i32) {
    %c0_i32 = arith.constant 0 : i32
    %c0_i32_0 = arith.constant 0 : i32
    %c0_i32_1 = arith.constant 0 : i32
    return %c0_i32, %c0_i32_0 : i32, i32
  }
  func.func @transform_7(%arg0: i32) -> (i32, i32) {
    %c0_i32 = arith.constant 0 : i32
    %c0_i32_0 = arith.constant 0 : i32
    %c0_i32_1 = arith.constant 0 : i32
    return %c0_i32, %c0_i32_0 : i32, i32
  }
  func.func @transform_8(%arg0: i32) -> (i32, i32) {
    %c0_i32 = arith.constant 0 : i32
    %c0_i32_0 = arith.constant 0 : i32
    %c0_i32_1 = arith.constant 0 : i32
    return %c0_i32, %c0_i32_0 : i32, i32
  }
  func.func @transform_9(%arg0: i32) -> (i32, i32) {
    %c0_i32 = arith.constant 0 : i32
    %c0_i32_0 = arith.constant 0 : i32
    %c0_i32_1 = arith.constant 0 : i32
    return %c0_i32, %c0_i32_0 : i32, i32
  }
}

</mosaic_0001>

<bundles_post_ra>
// kernel: tpu_custom_call.1
= control target key start
LH: loop header
LB: loop body
LE: loop exit
PB: predicated region body
PF: predicated region fallthrough
CT: control target
= control target key end

     0   :  { %14 = vsyncpa [#allocation4], 0  ;;  %s1186_s0 = inlined_call_operand.hbm [shape: f32[2,16], index: 0, kind: input, shape index: {}]   ;;  %s1187_s1 = inlined_call_operand.hbm [shape: f32[2,32], index: 1, kind: input, shape index: {}]   ;;  %s1188_s2 = inlined_call_operand.hbm [shape: f32[2,8], index: 2, kind: input, shape index: {}]   ;;  %s1189_s3 = inlined_call_operand.hbm [shape: f32[16,64], index: 3, kind: input, shape index: {}]   ;;  %s1190_s4 = inlined_call_operand.hbm [shape: f32[32,64], index: 4, kind: input, shape index: {}]   ;;  %s1191_s5 = inlined_call_operand.vmem [shape: f32[8,32], index: 5, kind: input, shape index: {}]   ;;  %s1192_s6 = inlined_call_operand.hbm [shape: f32[16,64], index: 6, kind: input, shape index: {}]   ;;  %s1193_s7 = inlined_call_operand.vmem [shape: f32[1,16], index: 7, kind: input, shape index: {}]   ;;  %s1194_s8 = inlined_call_operand.vmem [shape: f32[1,16], index: 8, kind: input, shape index: {}]   ;;  %s1195_s9 = inlined_call_operand.hbm [shape: f32[2,32], index: 9, kind: output, shape index: {}]  }
   0x1   :  { %15 = vsyncpa [#allocation7], 0 }
   0x2   :  { %16 = vsyncpa [#allocation10], 0 }
   0x3   :  { %17 = vsyncpa [#allocation13], 0 }
   0x4   :  { %18 = vsyncpa [#allocation5], 0  ;;  %s1018_s30 = smov [#allocation6]   ;;  %s1019_s11 = smov [#allocation9]  }
   0x5   :  { %s35_s10 = sshll.u32 %s1018_s30, 4  ;;  %s54_s12 = sshll.u32 %s1019_s11, 4  ;;  %s36_s10 = int_to_ptr.vmem [resolvable:$true] %s35_s10  ;;  %s55_s12 = int_to_ptr.vmem [resolvable:$true] %s54_s12 }
   0x6   :  { %s876_s13 = scalar_lea.vmem %s36_s10, 32  ;;  %p881_p1 = scmp.lt.s32.totalorder %s36_s10, %s36_s10 }
   0x7   :  { %p877_p0 = scmp.ne.s32.totalorder %s36_s10, %s876_s13  ;;  %p882_p2 = scmp.lt.s32.totalorder %s876_s13, %s876_s13 }
   0x9   :  { %p883_p3 = por %p882_p2, %p881_p1 }
   0xb   :  { %p884_p4 = pnand %p883_p3, %p877_p0 }
   0xd   :  { %887 = shalt.err (!%p884_p4)
}
   0xe   :  { %38 = dma.hbm_to_vmem [thread:$0]  %s1187_s1, 32, %s36_s10, [#allocation7]  }
   0xf   :  { %s896_s16 = scalar_lea.vmem %s55_s12, 256  ;;  %p901_p6 = scmp.lt.s32.totalorder %s55_s12, %s55_s12 }
  0x10   :  { %p897_p5 = scmp.ne.s32.totalorder %s55_s12, %s896_s16  ;;  %p902_p7 = scmp.lt.s32.totalorder %s896_s16, %s896_s16 }
  0x12   :  { %p903_p8 = por %p902_p7, %p901_p6 }
  0x14   :  { %p904_p9 = pnand %p903_p8, %p897_p5 }
  0x16   :  { %907 = shalt.err (!%p904_p9)
}
  0x17   :  { %s1020_s17 = smov 128   ;;  %s1021_s18 = smov 8  }
  0x18   :  { %60 = dma.hbm_to_vmem [thread:$0]  %s1189_s3, 256, %s55_s12, [#allocation10], %s1020_s17, %s1020_s17, %s1021_s18  }
  0x19   :  { %s1022_s21 = smov [#allocation3]   ;;  %s1023_s23 = smov [#allocation8]  }
  0x1a   :  { %s25_s22 = sshll.u32 %s1022_s21, 4  ;;  %s45_s1 = sshll.u32 %s1023_s23, 4  ;;  %s26_s22 = int_to_ptr.vmem [resolvable:$true] %s25_s22  ;;  %s46_s1 = int_to_ptr.vmem [resolvable:$true] %s45_s1 }
  0x1b   :  { %s916_s24 = scalar_lea.vmem %s26_s22, 32  ;;  %p921_p11 = scmp.lt.s32.totalorder %s26_s22, %s26_s22 }
  0x1c   :  { %p917_p10 = scmp.ne.s32.totalorder %s26_s22, %s916_s24  ;;  %p922_p12 = scmp.lt.s32.totalorder %s916_s24, %s916_s24 }
  0x1e   :  { %p923_p13 = por %p922_p12, %p921_p11 }
  0x20   :  { %p924_p0 = pnand %p923_p13, %p917_p10 }
  0x22   :  { %927 = shalt.err (!%p924_p0)
}
  0x23   :  { %28 = dma.hbm_to_vmem [thread:$0]  %s1186_s0, 32, %s26_s22, [#allocation4]  }
  0x24   :  { %s936_s27 = scalar_lea.vmem %s46_s1, 32  ;;  %p941_p2 = scmp.lt.s32.totalorder %s46_s1, %s46_s1 }
  0x25   :  { %p937_p1 = scmp.ne.s32.totalorder %s46_s1, %s936_s27  ;;  %p942_p3 = scmp.lt.s32.totalorder %s936_s27, %s936_s27 }
  0x27   :  { %p943_p4 = por %p942_p3, %p941_p2 }
  0x29   :  { %p944_p5 = pnand %p943_p4, %p937_p1 }
  0x2b   :  { %947 = shalt.err (!%p944_p5)
}
  0x2c   :  { %48 = dma.hbm_to_vmem [thread:$0]  %s1188_s2, 32, %s46_s1, [#allocation7]  }
  0x2d   :  { %s1024_s29 = smov [#allocation11]   ;;  %s1025_s10 = smov [#allocation12]  }
  0x2e   :  { %s66_s30 = sshll.u32 %s1024_s29, 4  ;;  %s80_s11 = sshll.u32 %s1025_s10, 4  ;;  %s67_s30 = int_to_ptr.vmem [resolvable:$true] %s66_s30  ;;  %s81_s11 = int_to_ptr.vmem [resolvable:$true] %s80_s11 }
  0x2f   :  { %s956_s12 = scalar_lea.vmem %s67_s30, 512  ;;  %p961_p7 = scmp.lt.s32.totalorder %s67_s30, %s67_s30 }
  0x30   :  { %p957_p6 = scmp.ne.s32.totalorder %s67_s30, %s956_s12  ;;  %p962_p8 = scmp.lt.s32.totalorder %s956_s12, %s956_s12 }
  0x32   :  { %p963_p9 = por %p962_p8, %p961_p7 }
  0x34   :  { %p964_p10 = pnand %p963_p9, %p957_p6 }
  0x36   :  { %967 = shalt.err (!%p964_p10)
}
  0x37   :  { %72 = dma.hbm_to_vmem [thread:$0]  %s1190_s4, 512, %s67_s30, [#allocation10], %s1020_s17, %s1020_s17, %s1021_s18  }
  0x38   :  { %s976_s2 = scalar_lea.vmem %s81_s11, 256  ;;  %p981_p12 = scmp.lt.s32.totalorder %s81_s11, %s81_s11 }
  0x39   :  { %p977_p11 = scmp.ne.s32.totalorder %s81_s11, %s976_s2  ;;  %p982_p13 = scmp.lt.s32.totalorder %s976_s2, %s976_s2 }
  0x3b   :  { %p983_p0 = por %p982_p13, %p981_p12 }
  0x3d   :  { %p984_p1 = pnand %p983_p0, %p977_p11 }
  0x3f   :  { %987 = shalt.err (!%p984_p1)
}
  0x40   :  { %86 = dma.hbm_to_vmem [thread:$0]  %s1192_s6, 256, %s81_s11, [#allocation13], %s1020_s17, %s1020_s17, %s1021_s18  }
  0x41   :  { %1008 = dma.done.wait [#allocation4], 32  }
  0x42   :  { %1009 = vsyncadd [#allocation4], 4294967264 }
  0x43   :  { %1010 = dma.done.wait [#allocation7], 64  }
  0x44   :  { %1011 = vsyncadd [#allocation7], 4294967232 }
  0x45   :  { %1012 = dma.done.wait [#allocation10], 768  }
  0x46   :  { %1013 = vsyncadd [#allocation10], 4294966528 }
  0x47   :  { %1014 = dma.done.wait [#allocation13], 256  }
  0x48   :  { %1015 = vsyncadd [#allocation13], 4294967040  ;;  %v1026_v0 = vmov 0.0   ;;  %vm1027_vm0 = vmmov 0   ;;  %v111_v1 = vld [vmem:[#allocation9 + $0x8] sm:$0xff]  ;;  %v110_v3 = vld [vmem:[#allocation9] sm:$0xff] }
  0x49   :  { %795 = vmatprep.subr.mxu0 %v1026_v0  ;;  %802 = vmatprep.subr.mxu1 %v1026_v0  ;;  %v217_v2 = vld [vmem:[#allocation11 + $0x18] sm:$0xff]  ;;  %v216_v4 = vld [vmem:[#allocation11 + $0x10] sm:$0xff]  ;;  %v109_v5 = vld [vmem:[#allocation3] sm:$0x3]  ;;  %vm112_vm1 = vcmask 130048   ;;  %vm218_vm2 = vcmask 261120  }
  0x4a   :  { %799 = vmatprep.mubr.msk.f32.mxu0 %vm1027_vm0, %v1026_v0  ;;  %810 = vmatprep.mubr.msk.f32.mxu1 %vm1027_vm0, %v1026_v0  ;;  %v215_v6 = vld [vmem:[#allocation11 + $0x8] sm:$0xff]  ;;  %v214_v7 = vld [vmem:[#allocation11] sm:$0xff]  ;;  %v1028_v51 = vmov -1.0   ;;  %vm319_vm5 = vcmask 122880   ;;  %vm348_vm6 = vcmask 123905   ;;  %s1029_s4 = smov 80  }
  0x4b   :  { %796 = vmatpush3.msra.mxu0 %v111_v1  ;;  %803 = vmatpush3.msra.mxu1 %v217_v2  ;;  %v213_v8 = vld [vmem:[#allocation6] sm:$0x3]  ;;  %s1030_s6 = smov 112   ;;  %s1031_s16 = smov 96   ;;  %vm406_vm7 = vcmask 64512   ;;  %vm600_vm8 = vcmask 392448  }
  0x4c   :  { %797 = vmatprep.subr.mxu0 %v1026_v0  ;;  %804 = vmatprep.subr.mxu1 %v1026_v0  ;;  %vm647_vm9 = vcmask 523648   ;;  %vm659_vm10 = vcmask 254080  }
  0x4d   :  { %798 = vmatpush3.msra.mxu0 %v110_v3  ;;  %805 = vmatpush3.msra.mxu1 %v216_v4 }
  0x4e   :  { %800 = vmatmul.mubr.msk.f32.vlgmr.msra.gmra.mxu0 %vm112_vm1, %v109_v5  ;;  %806 = vmatprep.subr.mxu1 %v1026_v0 }
  0x4f   :  { %807 = vmatpush3.msra.mxu1 %v215_v6  ;;  %813 = vmatprep.subr.mxu0 %v1026_v0 }
  0x50   :  { %808 = vmatprep.subr.mxu1 %v1026_v0  ;;  %815 = vmatprep.mubr.msk.f32.mxu0 %vm1027_vm0, %v1026_v0 }
  0x51   :  { %809 = vmatpush3.msra.mxu1 %v214_v7 }
  0x52   :  { %811 = vmatmul.mubr.msk.f32.vlgmr.msra.gmra.mxu1 %vm218_vm2, %v213_v8 }
 0x10e   :  { %v182_v9 = vpop.f32.mrf.mxu0 }
 0x10f   :  { %v187_v10 = vmul.f32 0.70710677, %v182_v9  ;;  %v186_v55 = vmul.f32 0.5, %v182_v9 }
 0x110   :  { %v801_v11 = vpop.f32.mrf.mxu0 }
 0x111   :  { %v190_v12 = vand.u32 2147483647, %v187_v10  ;;  %vm188_vm3 = vcmp.ge.f32.partialorder %v187_v10, 0.0 }
 0x112   :  { %v288_v13 = vpop.f32.mrf.mxu1  ;;  %v189_v52 = vsel %vm188_vm3, 1.0, %v1028_v51 }
 0x113   :  { %v191_v14 = vmul.f32 0.3275911, %v190_v12  ;;  %v293_v15 = vmul.f32 0.70710677, %v288_v13  ;;  %v204_v21 = vsub.f32 0.0, %v190_v12  ;;  %v292_v61 = vmul.f32 0.5, %v288_v13 }
 0x114   :  { %v812_v16 = vpop.f32.mrf.mxu1 }
 0x115   :  { %v192_v17 = vadd.f32 1.0, %v191_v14  ;;  %v296_v18 = vand.u32 2147483647, %v293_v15  ;;  %v205_v22 = vmul.f32 %v204_v21, %v190_v12  ;;  %vm294_vm4 = vcmp.ge.f32.partialorder %v293_v15, 0.0  ;;  %v404_v21 = vld [vmem:[#allocation8] sm:$0x3] }
 0x116   :  { %v295_v58 = vsel %vm294_vm4, 1.0, %v1028_v51 }
 0x117   :  { %840 = vrcp.f32 %v192_v17  ;;  %v297_v19 = vmul.f32 0.3275911, %v296_v18  ;;  %v310_v23 = vsub.f32 0.0, %v296_v18  ;;  %v206_v26 = vmul.f32 1.442695, %v205_v22  ;;  %v481_v22 = vld [vmem:[#allocation12 + $0x8] sm:$0xff] }
 0x119   :  { %v298_v20 = vadd.f32 1.0, %v297_v19  ;;  %v311_v27 = vmul.f32 %v310_v23, %v296_v18  ;;  %v480_v23 = vld [vmem:[#allocation12] sm:$0xff] }
 0x11b   :  { %842 = vrcp.f32 %v298_v20  ;;  %v312_v32 = vmul.f32 1.442695, %v311_v27  ;;  %v405_v20 = vld [vmem:[%s1191_s5] sm:$0xff] }
 0x11c   :  { %844 = vpow2.f32 %v206_v26  ;;  %814 = vmatpush3.msra.mxu0 %v405_v20 }
 0x11d   :  { %846 = vpow2.f32 %v312_v32  ;;  %816 = vmatmul.mubr.msk.f32.vlgmr.msra.gmra.mxu0 %vm406_vm7, %v404_v21  ;;  %818 = vmatprep.subr.mxu0 %v481_v22 }
 0x11e   :  { %819 = vmatpush3.msra.mxu0 %v481_v22 }
 0x11f   :  { %820 = vmatprep.subr.mxu0 %v480_v23 }
 0x120   :  { %821 = vmatpush3.msra.mxu0 %v480_v23 }
 0x124   :  { %v841_v24 = vpop.eup %840 }
 0x125   :  { %v195_v25 = vmul.f32 1.0614054, %v841_v24 }
 0x127   :  { %v196_v28 = vadd.f32 -1.4531521, %v195_v25 }
 0x128   :  { %v843_v29 = vpop.eup %842 }
 0x129   :  { %v197_v30 = vmul.f32 %v841_v24, %v196_v28  ;;  %v301_v31 = vmul.f32 1.0614054, %v843_v29  ;;  %v845_v45 = vpop.eup %844 }
 0x12a   :  { %v847_v50 = vpop.eup %846 }
 0x12b   :  { %v198_v33 = vadd.f32 1.4214138, %v197_v30  ;;  %v302_v34 = vadd.f32 -1.4531521, %v301_v31  ;;  %v776_v31 = vld [vmem:[%s1193_s7] ss:$0 sm:$0xff] }
 0x12c   :  { %s1032_s7 = smov [#allocation14]  }
 0x12d   :  { %v199_v35 = vmul.f32 %v841_v24, %v198_v33  ;;  %v303_v36 = vmul.f32 %v843_v29, %v302_v34  ;;  %v777_v33 = vld [vmem:[%s1194_s8] ss:$0 sm:$0xff]  ;;  %s762_s8 = sshll.u32 %s1032_s7, 4  ;;  %s763_s8 = int_to_ptr.vmem [resolvable:$true] %s762_s8 }
 0x12e   :  { %s988_s22 = scalar_lea.vmem %s763_s8, 32  ;;  %p993_p3 = scmp.lt.s32.totalorder %s763_s8, %s763_s8 }
 0x12f   :  { %v200_v37 = vadd.f32 -0.28449672, %v199_v35  ;;  %v304_v38 = vadd.f32 1.4214138, %v303_v36  ;;  %p989_p2 = scmp.ne.s32.totalorder %s763_s8, %s988_s22  ;;  %p994_p4 = scmp.lt.s32.totalorder %s988_s22, %s988_s22 }
 0x131   :  { %v201_v39 = vmul.f32 %v841_v24, %v200_v37  ;;  %v305_v40 = vmul.f32 %v843_v29, %v304_v38  ;;  %p995_p5 = por %p994_p4, %p993_p3 }
 0x133   :  { %v202_v41 = vadd.f32 0.2548296, %v201_v39  ;;  %v306_v42 = vadd.f32 -0.28449672, %v305_v40  ;;  %p996_p6 = pnand %p995_p5, %p989_p2 }
 0x135   :  { %v203_v43 = vmul.f32 %v841_v24, %v202_v41  ;;  %v307_v44 = vmul.f32 %v843_v29, %v306_v42  ;;  %v563_v42 = vlaneseq }
 0x137   :  { %v208_v46 = vmul.f32 %v845_v45, %v203_v43  ;;  %v308_v47 = vadd.f32 0.2548296, %v307_v44  ;;  %v564_v43 = vshrl.u32 %v563_v42, 7 }
 0x139   :  { %v209_v48 = vsub.f32 1.0, %v208_v46  ;;  %v309_v49 = vmul.f32 %v843_v29, %v308_v47  ;;  %v565_v44 = vsub.s32 0, %v564_v43  ;;  %v663_v51 = vsub.s32 1, %v564_v43 }
 0x13b   :  { %v210_v53 = vmul.f32 %v209_v48, %v189_v52  ;;  %v314_v54 = vmul.f32 %v847_v50, %v309_v49 }
 0x13d   :  { %v211_v56 = vadd.f32 1.0, %v210_v53  ;;  %v315_v57 = vsub.f32 1.0, %v314_v54 }
 0x13f   :  { %v212_v59 = vmul.f32 %v211_v56, %v186_v55  ;;  %v316_v60 = vmul.f32 %v315_v57, %v295_v58 }
 0x141   :  { %320 = vst.msk [vmem:[#allocation2] sm:$0x1] %vm319_vm5, %v212_v59  ;;  %v317_v62 = vadd.f32 1.0, %v316_v60  ;;  %330 = vrot.lane.b32.xlu1 %v212_v59, %s1029_s4  ;;  %322 = vrot.lane.b32.xlu0 %v212_v59, %s1030_s6 }
 0x142   :  { %349 = vst.msk [vmem:[#allocation2 + $0x7] sm:$0x2] %vm348_vm6, %v212_v59 }
 0x143   :  { %v318_v63 = vmul.f32 %v317_v62, %v292_v61 }
 0x145   :  { %334 = vst.msk [vmem:[#allocation2 + $0x4] sm:$0x1] %vm319_vm5, %v318_v63  ;;  %336 = vrot.lane.b32.xlu1 %v318_v63, %s1030_s6  ;;  %326 = vrot.lane.b32.xlu0 %v212_v59, %s1031_s16 }
 0x146   :  { %353 = vst.msk [vmem:[#allocation2 + $0xb] sm:$0x2] %vm348_vm6, %v318_v63 }
 0x149   :  { %344 = vrot.lane.b32.xlu1 %v318_v63, %s1029_s4  ;;  %340 = vrot.lane.b32.xlu0 %v318_v63, %s1031_s16 }
 0x1b3   :  { %v331_v0 = vpop.permute.xlu1 %330  ;;  %v323_v1 = vpop.permute.xlu0 %322 }
 0x1b4   :  { %333 = vst.msk [vmem:[#allocation2 + $0x3] sm:$0x1] %vm319_vm5, %v331_v0  ;;  %325 = vst.msk [vmem:[#allocation2 + $0x1] sm:$0x1] %vm319_vm5, %v323_v1 }
 0x1b5   :  { %352 = vst.msk [vmem:[#allocation2 + $0xa] sm:$0x2] %vm348_vm6, %v331_v0  ;;  %350 = vst.msk [vmem:[#allocation2 + $0x8] sm:$0x2] %vm348_vm6, %v323_v1 }
 0x1b7   :  { %v337_v2 = vpop.permute.xlu1 %336  ;;  %v327_v3 = vpop.permute.xlu0 %326 }
 0x1b8   :  { %339 = vst.msk [vmem:[#allocation2 + $0x5] sm:$0x1] %vm319_vm5, %v337_v2  ;;  %329 = vst.msk [vmem:[#allocation2 + $0x2] sm:$0x1] %vm319_vm5, %v327_v3 }
 0x1b9   :  { %354 = vst.msk [vmem:[#allocation2 + $0xc] sm:$0x2] %vm348_vm6, %v337_v2  ;;  %351 = vst.msk [vmem:[#allocation2 + $0x9] sm:$0x2] %vm348_vm6, %v327_v3 }
 0x1bb   :  { %v345_v4 = vpop.permute.xlu1 %344  ;;  %v341_v5 = vpop.permute.xlu0 %340 }
 0x1bc   :  { %347 = vst.msk [vmem:[#allocation2 + $0x7] sm:$0x1] %vm319_vm5, %v345_v4  ;;  %343 = vst.msk [vmem:[#allocation2 + $0x6] sm:$0x1] %vm319_vm5, %v341_v5 }
 0x1bd   :  { %356 = vst.msk [vmem:[#allocation2 + $0xe] sm:$0x2] %vm348_vm6, %v345_v4  ;;  %355 = vst.msk [vmem:[#allocation2 + $0xd] sm:$0x2] %vm348_vm6, %v341_v5 }
 0x1c3   :  { %v357_v7 = vld [vmem:[#allocation2] sm:$0xff] }
 0x1c4   :  { %v358_v6 = vld [vmem:[#allocation2 + $0x8] sm:$0xff]  ;;  %v359_v9 = vsel %vm112_vm1, %v357_v7, 0.0 }
 0x1c5   :  { %v362_v8 = vsel %vm112_vm1, %v358_v6, 0.0  ;;  %360 = vadd.xlane.f32.xlu0 %v359_v9 }
 0x1c6   :  { %363 = vadd.xlane.f32.xlu1 %v362_v8 }
 0x1dd   :  { %v476_v40 = vpop.f32.mrf.mxu0 }
 0x1de   :  { %v566_v48 = vrot.slane %v476_v40, %v565_v44  ;;  %v664_v52 = vrot.slane %v476_v40, %v663_v51 }
 0x1df   :  { %v817_v41 = vpop.f32.mrf.mxu0 }
 0x24e   :  { %v361_v11 = vpop.xlane.xlu0 %360 }
 0x24f   :  { %v364_v10 = vpop.xlane.xlu1 %363  ;;  %v366_v13 = vmul.f32 0.0625, %v361_v11 }
 0x250   :  { %v367_v12 = vmul.f32 0.0625, %v364_v10 }
 0x251   :  { %v368_v15 = vsub.f32 %v357_v7, %v366_v13 }
 0x252   :  { %v369_v14 = vsub.f32 %v358_v6, %v367_v12 }
 0x253   :  { %v370_v16 = vmul.f32 %v368_v15, %v368_v15 }
 0x254   :  { %v371_v18 = vmul.f32 %v369_v14, %v369_v14 }
 0x255   :  { %v372_v17 = vsel %vm112_vm1, %v370_v16, 0.0 }
 0x256   :  { %373 = vadd.xlane.f32.xlu0 %v372_v17  ;;  %v375_v19 = vsel %vm112_vm1, %v371_v18, 0.0 }
 0x25a   :  { %376 = vadd.xlane.f32.xlu0 %v375_v19 }
 0x2df   :  { %v374_v24 = vpop.xlane.xlu0 %373 }
 0x2e0   :  { %v378_v25 = vmul.f32 0.0625, %v374_v24 }
 0x2e2   :  { %v380_v26 = vadd.f32 1e-05, %v378_v25 }
 0x2e3   :  { %v377_v27 = vpop.xlane.xlu0 %376 }
 0x2e4   :  { %848 = vrsqrt.f32 %v380_v26  ;;  %v379_v28 = vmul.f32 0.0625, %v377_v27 }
 0x2e6   :  { %v381_v29 = vadd.f32 1e-05, %v379_v28 }
 0x2e8   :  { %850 = vrsqrt.f32 %v381_v29 }
 0x2f1   :  { %v849_v30 = vpop.eup %848 }
 0x2f2   :  { %v384_v32 = vmul.f32 %v849_v30, %v368_v15 }
 0x2f4   :  { %v393_v34 = vmul.f32 %v776_v31, %v384_v32 }
 0x2f5   :  { %v851_v35 = vpop.eup %850 }
 0x2f6   :  { %v385_v36 = vmul.f32 %v851_v35, %v369_v14  ;;  %v402_v37 = vadd.f32 %v777_v33, %v393_v34 }
 0x2f8   :  { %v394_v38 = vmul.f32 %v776_v31, %v385_v36  ;;  %822 = vmatprep.mubr.msk.f32.mxu0 %vm112_vm1, %v402_v37 }
 0x2fa   :  { %v403_v39 = vadd.f32 %v777_v33, %v394_v38 }
 0x2fc   :  { %823 = vmatmul.mubr.msk.f32.vlgmr.msra.gmra.mxu0 %vm112_vm1, %v403_v39 }
 0x3bc   :  { %v1151_v45 = vpop.f32.mrf.mxu0 }
 0x3bd   :  { %v669_v46 = vand.u32 2147483647, %v1151_v45  ;;  %v665_v53 = vmul.f32 %v1151_v45, %v664_v52 }
 0x3be   :  { %v1154_v47 = vpop.f32.mrf.mxu0 }
 0x3bf   :  { %717 = vrot.lane.b32.xlu1 %v669_v46, %s1029_s4  ;;  %671 = vrot.lane.b32.xlu0 %v669_v46, %s1031_s16  ;;  %v567_v49 = vmul.f32 %v566_v48, %v1154_v47  ;;  %v571_v50 = vand.u32 2147483647, %v1154_v47  ;;  %v666_v54 = vsel %vm112_vm1, %v665_v53, 0.0 }
 0x3c1   :  { %v568_v55 = vsel %vm112_vm1, %v567_v49, 0.0 }
 0x3c3   :  { %573 = vrot.lane.b32.xlu1 %v571_v50, %s1031_s16  ;;  %614 = vrot.lane.b32.xlu0 %v567_v49, %s1030_s6 }
 0x3c7   :  { %620 = vrot.lane.b32.xlu1 %v571_v50, %s1029_s4 }
 0x3cb   :  { %711 = vrot.lane.b32.xlu1 %v665_v53, %s1030_s6 }
 0x3e2   :  { %667 = vadd.xlane.f32.xlu0 %v666_v54 }
 0x3ef   :  { %569 = vadd.xlane.f32.xlu1 %v568_v55 }
 0x431   :  { %v718_v56 = vpop.permute.xlu1 %717  ;;  %v672_v57 = vpop.permute.xlu0 %671 }
 0x432   :  { %v720_v58 = vsel %vm112_vm1, %v718_v56, 0.0  ;;  %v674_v59 = vsel %vm112_vm1, %v672_v57, 0.0 }
 0x433   :  { %721 = vadd.xlane.f32.xlu0 %v720_v58  ;;  %675 = vadd.xlane.f32.xlu1 %v674_v59 }
 0x435   :  { %v574_v60 = vpop.permute.xlu1 %573  ;;  %v615_v61 = vpop.permute.xlu0 %614 }
 0x436   :  { %v576_v62 = vsel %vm112_vm1, %v574_v60, 0.0  ;;  %v617_v63 = vsel %vm112_vm1, %v615_v61, 0.0 }
 0x437   :  { %577 = vadd.xlane.f32.xlu0 %v576_v62  ;;  %618 = vadd.xlane.f32.xlu1 %v617_v63 }
 0x439   :  { %v621_v0 = vpop.permute.xlu1 %620 }
 0x43a   :  { %v623_v1 = vsel %vm112_vm1, %v621_v0, 0.0 }
 0x43b   :  { %624 = vadd.xlane.f32.xlu0 %v623_v1 }
 0x43d   :  { %v712_v2 = vpop.permute.xlu1 %711 }
 0x43e   :  { %v714_v3 = vsel %vm112_vm1, %v712_v2, 0.0 }
 0x43f   :  { %715 = vadd.xlane.f32.xlu0 %v714_v3 }
 0x46b   :  { %v668_v4 = vpop.xlane.xlu0 %667 }
 0x478   :  { %v570_v5 = vpop.xlane.xlu1 %569 }
 0x4bc   :  { %v722_v6 = vpop.xlane.xlu0 %721  ;;  %v676_v7 = vpop.xlane.xlu1 %675 }
 0x4bd   :  { %v677_v8 = vmul.f32 0.0625, %v676_v7  ;;  %v723_v20 = vmul.f32 0.0625, %v722_v6 }
 0x4bf   :  { %v678_v9 = vmul.f32 %v677_v8, %v668_v4 }
 0x4c0   :  { %v578_v10 = vpop.xlane.xlu0 %577  ;;  %v619_v19 = vpop.xlane.xlu1 %618 }
 0x4c1   :  { %v679_v11 = vmul.f32 0.25, %v678_v9  ;;  %v579_v12 = vmul.f32 0.0625, %v578_v10 }
 0x4c3   :  { %v680_v13 = vrot.slane %v679_v11, 4  ;;  %v580_v14 = vmul.f32 %v579_v12, %v570_v5 }
 0x4c4   :  { %v625_v15 = vpop.xlane.xlu0 %624 }
 0x4c5   :  { %v681_v16 = vmax.f32 %v679_v11, %v680_v13  ;;  %v581_v17 = vmul.f32 0.25, %v580_v14  ;;  %v626_v18 = vmul.f32 0.0625, %v625_v15 }
 0x4c7   :  { %v682_v21 = vrot.slane %v681_v16, 2  ;;  %v582_v22 = vrot.slane %v581_v17, 4  ;;  %v627_v23 = vmul.f32 %v626_v18, %v619_v19 }
 0x4c8   :  { %v716_v24 = vpop.xlane.xlu0 %715 }
 0x4c9   :  { %v683_v25 = vmax.f32 %v681_v16, %v682_v21  ;;  %v583_v26 = vmax.f32 %v581_v17, %v582_v22  ;;  %v628_v27 = vmul.f32 0.25, %v627_v23  ;;  %v724_v28 = vmul.f32 %v723_v20, %v716_v24 }
 0x4cb   :  { %v684_v29 = vrot.slane %v683_v25, 1  ;;  %v584_v30 = vrot.slane %v583_v26, 2  ;;  %v629_v31 = vrot.slane %v628_v27, 4  ;;  %v725_v32 = vmul.f32 0.25, %v724_v28 }
 0x4cd   :  { %v685_v33 = vmax.f32 %v683_v25, %v684_v29  ;;  %v585_v34 = vmax.f32 %v583_v26, %v584_v30  ;;  %v630_v35 = vmax.f32 %v628_v27, %v629_v31  ;;  %v726_v36 = vrot.slane %v725_v32, 4 }
 0x4cf   :  { %v686_v37 = vsub.f32 %v679_v11, %v685_v33  ;;  %v586_v38 = vrot.slane %v585_v34, 1  ;;  %v631_v39 = vrot.slane %v630_v35, 2  ;;  %v727_v40 = vmax.f32 %v725_v32, %v726_v36 }
 0x4d1   :  { %v687_v41 = vmul.f32 1.442695, %v686_v37  ;;  %v587_v42 = vmax.f32 %v585_v34, %v586_v38  ;;  %v632_v43 = vmax.f32 %v630_v35, %v631_v39  ;;  %v728_v44 = vrot.slane %v727_v40, 2 }
 0x4d3   :  { %852 = vpow2.f32 %v687_v41  ;;  %v588_v46 = vsub.f32 %v581_v17, %v587_v42  ;;  %v633_v48 = vrot.slane %v632_v43, 1  ;;  %v729_v49 = vmax.f32 %v727_v40, %v728_v44 }
 0x4d5   :  { %v589_v50 = vmul.f32 1.442695, %v588_v46  ;;  %v634_v51 = vmax.f32 %v632_v43, %v633_v48  ;;  %v730_v52 = vrot.slane %v729_v49, 1 }
 0x4d7   :  { %854 = vpow2.f32 %v589_v50  ;;  %v635_v53 = vsub.f32 %v628_v27, %v634_v51  ;;  %v731_v54 = vmax.f32 %v729_v49, %v730_v52 }
 0x4d9   :  { %v636_v55 = vmul.f32 1.442695, %v635_v53  ;;  %v732_v56 = vsub.f32 %v725_v32, %v731_v54 }
 0x4db   :  { %856 = vpow2.f32 %v636_v55  ;;  %v733_v57 = vmul.f32 1.442695, %v732_v56 }
 0x4dd   :  { %858 = vpow2.f32 %v733_v57 }
 0x4e0   :  { %v853_v58 = vpop.eup %852 }
 0x4e1   :  { %v689_v59 = vrot.slane %v853_v58, 4 }
 0x4e3   :  { %v690_v60 = vadd.f32 %v853_v58, %v689_v59 }
 0x4e4   :  { %v855_v61 = vpop.eup %854 }
 0x4e5   :  { %v591_v62 = vrot.slane %v855_v61, 4  ;;  %v691_v63 = vrot.slane %v690_v60, 2 }
 0x4e7   :  { %v592_v0 = vadd.f32 %v855_v61, %v591_v62  ;;  %v692_v1 = vadd.f32 %v691_v63, %v690_v60 }
 0x4e8   :  { %v857_v2 = vpop.eup %856 }
 0x4e9   :  { %v593_v3 = vrot.slane %v592_v0, 2  ;;  %v693_v4 = vrot.slane %v692_v1, 1  ;;  %v638_v5 = vrot.slane %v857_v2, 4 }
 0x4ea   :  { %v859_v6 = vpop.eup %858 }
 0x4eb   :  { %v594_v7 = vadd.f32 %v593_v3, %v592_v0  ;;  %v694_v8 = vadd.f32 %v693_v4, %v692_v1  ;;  %v639_v9 = vadd.f32 %v857_v2, %v638_v5  ;;  %v735_v10 = vrot.slane %v859_v6, 4 }
 0x4ed   :  { %v595_v11 = vrot.slane %v594_v7, 1  ;;  %860 = vrcp.f32 %v694_v8  ;;  %v640_v12 = vrot.slane %v639_v9, 2  ;;  %v736_v13 = vadd.f32 %v859_v6, %v735_v10 }
 0x4ef   :  { %v596_v14 = vadd.f32 %v595_v11, %v594_v7  ;;  %v641_v15 = vadd.f32 %v640_v12, %v639_v9  ;;  %v737_v16 = vrot.slane %v736_v13, 2 }
 0x4f1   :  { %862 = vrcp.f32 %v596_v14  ;;  %v642_v17 = vrot.slane %v641_v15, 1  ;;  %v738_v18 = vadd.f32 %v737_v16, %v736_v13 }
 0x4f3   :  { %v643_v19 = vadd.f32 %v642_v17, %v641_v15  ;;  %v739_v20 = vrot.slane %v738_v18, 1 }
 0x4f5   :  { %864 = vrcp.f32 %v643_v19  ;;  %v740_v21 = vadd.f32 %v739_v20, %v738_v18 }
 0x4f7   :  { %866 = vrcp.f32 %v740_v21 }
 0x4fa   :  { %v861_v22 = vpop.eup %860 }
 0x4fb   :  { %v696_v23 = vmul.f32 %v861_v22, %v853_v58 }
 0x4fd   :  { %v697_v24 = vmul.f32 %v1151_v45, %v696_v23 }
 0x4fe   :  { %v863_v25 = vpop.eup %862 }
 0x4ff   :  { %v598_v26 = vmul.f32 %v863_v25, %v855_v61  ;;  %v698_v27 = vsel %vm600_vm8, %v697_v24, 0.0 }
 0x500   :  { %v699_v28 = vrot.slane %v698_v27, 4 }
 0x501   :  { %v599_v29 = vmul.f32 %v598_v26, %v1154_v47 }
 0x502   :  { %v865_v30 = vpop.eup %864  ;;  %v700_v31 = vadd.f32 %v699_v28, %v698_v27 }
 0x503   :  { %v601_v32 = vsel %vm600_vm8, %v599_v29, 0.0  ;;  %v645_v33 = vmul.f32 %v865_v30, %v857_v2 }
 0x504   :  { %v867_v34 = vpop.eup %866  ;;  %v602_v35 = vrot.slane %v601_v32, 4  ;;  %v701_v39 = vrot.slane %v700_v31, 2 }
 0x505   :  { %v646_v36 = vmul.f32 %v645_v33, %v1154_v47  ;;  %v742_v37 = vmul.f32 %v867_v34, %v859_v6 }
 0x506   :  { %v603_v38 = vadd.f32 %v602_v35, %v601_v32  ;;  %v702_v48 = vadd.f32 %v701_v39, %v700_v31 }
 0x507   :  { %v648_v40 = vsel %vm647_vm9, %v646_v36, 0.0  ;;  %v743_v41 = vmul.f32 %v1151_v45, %v742_v37 }
 0x508   :  { %v604_v42 = vrot.slane %v603_v38, 2  ;;  %v649_v43 = vrot.slane %v648_v40, 4  ;;  %v703_v55 = vrot.slane %v702_v48, 1 }
 0x509   :  { %v744_v44 = vsel %vm647_vm9, %v743_v41, 0.0 }
 0x50a   :  { %v605_v46 = vadd.f32 %v604_v42, %v603_v38  ;;  %v650_v49 = vadd.f32 %v649_v43, %v648_v40  ;;  %v745_v50 = vrot.slane %v744_v44, 4  ;;  %v704_v59 = vadd.f32 %v703_v55, %v702_v48 }
 0x50c   :  { %v606_v51 = vrot.slane %v605_v46, 1  ;;  %v651_v52 = vrot.slane %v650_v49, 2  ;;  %v746_v53 = vadd.f32 %v745_v50, %v744_v44 }
 0x50e   :  { %v607_v54 = vadd.f32 %v606_v51, %v605_v46  ;;  %v652_v56 = vadd.f32 %v651_v52, %v650_v49  ;;  %v747_v47 = vrot.slane %v746_v53, 2 }
 0x510   :  { %609 = vrot.lane.b32.xlu1 %v607_v54, %s1031_s16  ;;  %v653_v57 = vrot.slane %v652_v56, 1  ;;  %v748_v58 = vadd.f32 %v747_v47, %v746_v53 }
 0x512   :  { %v654_v45 = vadd.f32 %v653_v57, %v652_v56  ;;  %v749_v60 = vrot.slane %v748_v58, 1 }
 0x514   :  { %706 = vrot.lane.b32.xlu1 %v704_v59, %s1031_s16  ;;  %656 = vrot.lane.b32.xlu0 %v654_v45, %s1031_s16  ;;  %v750_v61 = vadd.f32 %v749_v60, %v748_v58 }
 0x518   :  { %752 = vrot.lane.b32.xlu1 %v750_v61, %s1031_s16 }
 0x582   :  { %v610_v62 = vpop.permute.xlu1 %609 }
 0x583   :  { %612 = vst.msk [vmem:[#allocation14] sm:$0x1] %vm319_vm5, %v610_v62 }
 0x586   :  { %v657_v63 = vpop.permute.xlu0 %656  ;;  %v707_v0 = vpop.permute.xlu1 %706 }
 0x587   :  { %709 = vst.msk [vmem:[#allocation14 + $0x1] sm:$0x1] %vm319_vm5, %v707_v0 }
 0x588   :  { %660 = vst.msk [vmem:[#allocation14] sm:$0x1] %vm659_vm10, %v657_v63 }
 0x58a   :  { %v753_v1 = vpop.permute.xlu1 %752 }
 0x58b   :  { %755 = vst.msk [vmem:[#allocation14 + $0x1] sm:$0x1] %vm659_vm10, %v753_v1 }
 0x58c   :  { %999 = shalt.err (!%p996_p6)
}
 0x58d   :  { %765 = dma.vmem_to_hbm [thread:$0]  %s763_s8, 32, %s1195_s9, [#allocation5]  }
 0x58e   :  { %1016 = dma.done.wait [#allocation5], 32  }
 0x58f   :  { %1017 = vsyncadd [#allocation5], 4294967264 }
 0x590   :  { %769 = vsyncpa [#allocation4], 1 }
 0x591   :  { %770 = vsyncpa [#allocation7], 1 }
 0x592   :  { %771 = vsyncpa [#allocation10], 1 }
 0x593   :  { %772 = vsyncpa [#allocation13], 1 }
 0x594   :  { %773 = vsyncpa [#allocation5], 1 }

</bundles_post_ra>
